<compile_context>
chip_gen: v7x
topology: tpu7x:2x2x1
jax: 0.10.0
libtpu: 0.0.40
codegen_flags: <defaults>
</compile_context>

<pallas_src>
import jax
import jax.numpy as jnp
from jax.experimental import pallas as pl
from jax.experimental.pallas import tpu as pltpu


# Gridless whole-array block: keep well under the smallest default scoped VMEM
# (v5e: 16 MiB). in + out = 8 bytes per padded action -> ~2M actions is safe.
# TODO(synk): for larger action spaces, add a 1-D grid over the action axis
# (two-pass: partial-sum scratch, then scale pass) or raise vmem_limit_bytes.
_MAX_GRIDLESS_PADDED_ACTIONS = 1 << 21  # 2M


def _normalize_probs_kernel(p_ref, out_ref):
    # p_ref: (8, cols) f32, zero-padded beyond the valid actions.
    p = p_ref[...]
    # Padding zeros do not change the total sum.
    total = jnp.sum(p, axis=(0, 1), keepdims=True)       # (1, 1)
    inv = pl.reciprocal(total, approx=False)              # exact, matches torch divide
    out_ref[...] = p * inv


@jax.jit
def _normalized_probs(probs_param):
    """Fused (cast + pad + reshape + pallas_call + slice) normalization."""
    (actions,) = probs_param.shape

    # Pad the action axis to a multiple of 1024 = 8 sublanes x 128 lanes so the
    # kernel sees a fully dense (8, cols) tile.
    pad = (-actions) % 1024
    padded = actions + pad
    assert padded <= _MAX_GRIDLESS_PADDED_ACTIONS, (
        "action space too large for the gridless whole-array VMEM path; "
        "add a grid over the action axis or raise vmem_limit_bytes")
    cols = padded // 8

    p = probs_param.astype(jnp.float32)
    if pad:
        p = jnp.pad(p, (0, pad))
    p2d = p.reshape(8, cols)

    out = pl.pallas_call(
        _normalize_probs_kernel,
        out_shape=jax.ShapeDtypeStruct((8, cols), jnp.float32),
        in_specs=[pl.BlockSpec(memory_space=pltpu.MemorySpace.VMEM)],
        out_specs=pl.BlockSpec(memory_space=pltpu.MemorySpace.VMEM),
    )(p2d)

    return out.reshape(padded)[:actions]


def random_discrete_policy_onehot_probs(input_unused, probs_param):
    """Functional Pallas equivalent of the module's forward.

    `input_unused` mirrors the PyTorch signature; forward() never touches it.
    Returns the OneHotCategorical distribution's renormalized probs, (actions,).
    """
    del input_unused
    return _normalized_probs(probs_param)


class RandomDiscretePolicyWithOneHotOutput:
    """Module-style wrapper that hoists the normalization out of the step loop.

    forward() ignores its input and the result only depends on `self.probs`,
    so the normalized probs are computed once per parameter update and cached.
    """

    def __init__(self, actions):
        self.actions = actions
        self.probs = jnp.ones((actions,), jnp.float32) / actions
        self._cached_param = None
        self._cached_norm = None

    def forward(self, input_unused):
        del input_unused
        if self._cached_norm is None or self._cached_param is not self.probs:
            self._cached_norm = _normalized_probs(self.probs)
            self._cached_param = self.probs
        # TODO(synk): the OneHotCategorical distribution object and its
        # stochastic .sample() one-hot draw have no deterministic tensor
        # equivalent; only the distribution's normalized probs are returned.
        return self._cached_norm


if __name__ == "__main__":
    key = jax.random.PRNGKey(0)
    k_in, k_p = jax.random.split(key)

    actions = 16
    batch, features = 2, 8

    # Dummy input (ignored by the module's forward, kept for signature parity).
    dummy_input = jax.random.normal(k_in, (batch, features), dtype=jnp.float32)

    # Case 1: the module's own initialization, probs = ones(actions) / actions.
    policy = RandomDiscretePolicyWithOneHotOutput(actions)
    out_init = jax.block_until_ready(policy.forward(dummy_input))
    ref_init = policy.probs / jnp.sum(policy.probs)
    assert out_init.shape == (actions,)
    assert jnp.allclose(out_init, ref_init, atol=1e-6), "mismatch (init params)"

    # Cached path: second forward reuses the hoisted result.
    out_cached = policy.forward(dummy_input)
    assert out_cached is out_init, "normalization was not hoisted/cached"

    # Case 2: a "trained" positive parameter vector, exercising normalization.
    probs_trained = jax.random.uniform(
        k_p, (actions,), dtype=jnp.float32, minval=0.1, maxval=1.0)
    policy.probs = probs_trained  # parameter update -> cache invalidated
    out_trained = jax.block_until_ready(policy.forward(dummy_input))
    ref_trained = probs_trained / jnp.sum(probs_trained)
    assert jnp.allclose(out_trained, ref_trained, atol=1e-6), "mismatch (trained params)"
    assert jnp.allclose(jnp.sum(out_trained), 1.0, atol=1e-6)
    assert out_trained.shape == (actions,)

    # Functional entry point parity.
    out_fn = jax.block_until_ready(
        random_discrete_policy_onehot_probs(dummy_input, probs_trained))
    assert jnp.allclose(out_fn, ref_trained, atol=1e-6), "mismatch (functional path)"

    print("KERNEL_OK")
</pallas_src>

<mosaic_0001>
module attributes {stable_mosaic.version = 11 : i64} {
  func.func @_normalize_probs_kernel(%arg0: memref<8x128xf32, #tpu.memory_space<vmem>>, %arg1: memref<8x128xf32, #tpu.memory_space<vmem>>) attributes {dimension_semantics = [], scalar_prefetch = 0 : i64, scratch_operands = 0 : i64, tpu.core_type = #tpu.core_type<tc>} {
    %c0 = arith.constant 0 : index
    %c0_0 = arith.constant 0 : index
    %0 = vector.load %arg0[%c0, %c0_0] : memref<8x128xf32, #tpu.memory_space<vmem>>, vector<8x128xf32>
    %1 = vector.shape_cast %0 : vector<8x128xf32> to vector<1x8x128xf32>
    %cst = arith.constant dense<0.000000e+00> : vector<1xf32>
    %2 = vector.multi_reduction <add>, %1, %cst [1, 2] : vector<1x8x128xf32> to vector<1xf32>
    %3 = vector.shape_cast %2 : vector<1xf32> to vector<1x1x1xf32>
    %4 = vector.extract %3[0, 0, 0] : f32 from vector<1x1x1xf32>
    %5 = vector.broadcast %4 : f32 to vector<1x1xf32>
    %6 = tpu.reciprocal %5 : vector<1x1xf32> -> vector<1x1xf32>
    %7 = vector.broadcast %6 : vector<1x1xf32> to vector<8x128xf32>
    %8 = arith.mulf %0, %7 : vector<8x128xf32>
    %c0_1 = arith.constant 0 : index
    %c0_2 = arith.constant 0 : index
    %9 = vector.load %arg1[%c0_1, %c0_2] : memref<8x128xf32, #tpu.memory_space<vmem>>, vector<8x128xf32>
    tpu.vector_store %arg1[%c0_1, %c0_2], %8 {strides = array<i32>} : memref<8x128xf32, #tpu.memory_space<vmem>>, vector<8x128xf32>,
    return
  }
}

</mosaic_0001>

<bundles_post_ra>
// kernel: _normalized_probs.1
= control target key start
LH: loop header
LB: loop body
LE: loop exit
PB: predicated region body
PF: predicated region fallthrough
CT: control target
= control target key end

     0   :  { %s46_s0 = inlined_call_operand.vmem [shape: f32[8,128], index: 0, kind: input, shape index: {}]   ;;  %s47_s1 = inlined_call_operand.vmem [shape: f32[8,128], index: 1, kind: output, shape index: {}]  }
   0x1   :  { %v8_v0 = vld [vmem:[%s46_s0] sm:$0xff] }
   0x2   :  { %9 = vadd.xlane.f32.xlu0 %v8_v0 }
  0x8f   :  { %v10_v1 = vpop.xlane.xlu0 %9 }
  0x90   :  { %v11_v2 = vrot.slane %v10_v1, 4 }
  0x92   :  { %v12_v3 = vadd.f32 %v11_v2, %v10_v1 }
  0x94   :  { %v13_v4 = vrot.slane %v12_v3, 2 }
  0x96   :  { %v14_v5 = vadd.f32 %v13_v4, %v12_v3 }
  0x98   :  { %v15_v6 = vrot.slane %v14_v5, 1 }
  0x9a   :  { %v16_v7 = vadd.f32 %v15_v6, %v14_v5 }
  0x9c   :  { %26 = vpush %v16_v7 }
  0xcd   :  { %s27_s8 = spop %26 }
  0xce   :  { %v18_v8 = vstv %s27_s8 }
  0xcf   :  { %28 = vrcp.f32 %v18_v8 }
  0xd9   :  { %v29_v9 = vpop.eup %28 }
  0xda   :  { %v20_v10 = vmul.f32 %v29_v9, %v8_v0 }
  0xdc   :  { %21 = vst [vmem:[%s47_s1] sm:$0xff] %v20_v10 }

</bundles_post_ra>
